<compile_context>
chip_gen: v5e
topology: v5e:2x2
jax: 0.10.0
libtpu: 0.0.40
codegen_flags: <defaults>
</compile_context>

<pallas_src>
import functools

import numpy as np
import jax
import jax.numpy as jnp
from jax import lax
from jax.experimental import pallas as pl
from jax.experimental.pallas import tpu as pltpu

_EPS = 1e-7
_LANES = 128  # target dim M is padded to a multiple of this (lane-dense tiles)


# ---------------------------------------------------------------------------
# Kernel 1: matcher cost matrix, tiled over (batch-chunk, Q-tile, M-tile)
#   cost[b,q,m] = L1(pbox_q, tbox_m) - GIoU(pbox_q, tbox_m) - prob[q, label_m+1]
# ---------------------------------------------------------------------------
def _cost_kernel(logits_ref, pboxes_ref, onehot_ref, slab_ref, cost_ref):
    logits = logits_ref[...]          # (BB, TQ, C)
    pb = pboxes_ref[...]              # (BB, TQ, 4)
    onehot = onehot_ref[...]          # (BB, C, TM)  one-hot of (label + 1)
    slab = slab_ref[...]              # (BB, 8, TM)  rows 0-3: tbox cx,cy,w,h

    # softmax over classes (exact)
    mx = jnp.max(logits, axis=-1, keepdims=True)
    e = jnp.exp(logits - mx)
    prob = e / jnp.sum(e, axis=-1, keepdims=True)         # (BB, TQ, C)

    # class cost on the MXU: cls[b,q,m] = prob[b, q, label_m + 1]
    cls_cost = jnp.einsum("bqc,bcm->bqm", prob, onehot,
                          preferred_element_type=jnp.float32)   # (BB, TQ, TM)

    pcx, pcy = pb[:, :, 0:1], pb[:, :, 1:2]
    pw, ph = pb[:, :, 2:3], pb[:, :, 3:4]
    tcx, tcy = slab[:, 0:1, :], slab[:, 1:2, :]
    tw, th = slab[:, 2:3, :], slab[:, 3:4, :]

    # pairwise L1 (torch.cdist, p=1, on cxcywh) -> (BB, TQ, TM)
    cost = (jnp.abs(pcx - tcx) + jnp.abs(pcy - tcy)
            + jnp.abs(pw - tw) + jnp.abs(ph - th))

    # pairwise generalized IoU (cxcywh -> xyxy); eps guards padded boxes
    p_x1, p_y1 = pcx - 0.5 * pw, pcy - 0.5 * ph
    p_x2, p_y2 = pcx + 0.5 * pw, pcy + 0.5 * ph
    t_x1, t_y1 = tcx - 0.5 * tw, tcy - 0.5 * th
    t_x2, t_y2 = tcx + 0.5 * tw, tcy + 0.5 * th
    iw = jnp.maximum(jnp.minimum(p_x2, t_x2) - jnp.maximum(p_x1, t_x1), 0.0)
    ih = jnp.maximum(jnp.minimum(p_y2, t_y2) - jnp.maximum(p_y1, t_y1), 0.0)
    inter = iw * ih
    union = pw * ph + tw * th - inter
    iou = inter / (union + _EPS)
    cw = jnp.maximum(p_x2, t_x2) - jnp.minimum(p_x1, t_x1)
    ch = jnp.maximum(p_y2, t_y2) - jnp.minimum(p_y1, t_y1)
    c_area = cw * ch
    giou = iou - (c_area - union) / (c_area + _EPS)

    cost_ref[...] = cost - giou - cls_cost                # lane-dense store


def compute_cost_matrix(logits_p, boxes_p, onehot, slab, BB, TQ, TM):
    Bp, Qp, C = logits_p.shape
    M = slab.shape[-1]
    return pl.pallas_call(
        _cost_kernel,
        out_shape=jax.ShapeDtypeStruct((Bp, Qp, M), jnp.float32),
        grid_spec=pltpu.PrefetchScalarGridSpec(
            num_scalar_prefetch=0,
            grid=(Bp // BB, Qp // TQ, M // TM),
            in_specs=[
                pl.BlockSpec((BB, TQ, C), lambda b, q, m: (b, q, 0)),
                pl.BlockSpec((BB, TQ, 4), lambda b, q, m: (b, q, 0)),
                pl.BlockSpec((BB, C, TM), lambda b, q, m: (b, 0, m)),
                pl.BlockSpec((BB, 8, TM), lambda b, q, m: (b, 0, m)),
            ],
            out_specs=pl.BlockSpec((BB, TQ, TM), lambda b, q, m: (b, q, m)),
        ),
        compiler_params=pltpu.CompilerParams(
            dimension_semantics=("parallel", "parallel", "arbitrary")),
    )(logits_p, boxes_p, onehot, slab)


# ---------------------------------------------------------------------------
# Kernel 2: matched-pair losses, one batch chunk per grid step ("parallel").
#   The matched-row gather is a batched MXU contraction over Q with a 0/1
#   selection matrix built from the host-side assignment.  Each chunk writes
#   one lane-dense (8, 128) partial row [loss, lcls, lbox, 0...].
# ---------------------------------------------------------------------------
def _loss_kernel(C, logits_ref, pboxes_ref, onehot_ref, slab_ref, out_ref):
    logits = logits_ref[...]          # (BB, Qp, C)
    pb = pboxes_ref[...]              # (BB, Qp, 4)
    onehot = onehot_ref[...]          # (BB, C, M)
    slab = slab_ref[...]              # (BB, 8, M)
    BB, Qp, _ = logits.shape
    M = slab.shape[-1]

    tcx, tcy = slab[:, 0:1, :], slab[:, 1:2, :]
    tw, th = slab[:, 2:3, :], slab[:, 3:4, :]
    valid = slab[:, 4:5, :]                               # (BB, 1, M)
    rows = slab[:, 5:6, :].astype(jnp.int32)              # matched query idx

    # selection: sel[b,q,m] = (q == rows[b,m]) & valid[b,m]
    q_iota = lax.broadcasted_iota(jnp.int32, (BB, Qp, M), 1)
    sel = jnp.where(q_iota == rows, 1.0, 0.0) * valid     # (BB, Qp, M)

    # gather matched logits / boxes with MXU contractions over Q
    matched_lg = jnp.einsum("bqc,bqm->bcm", logits, sel,
                            preferred_element_type=jnp.float32)   # (BB, C, M)
    matched_bx = jnp.einsum("bqd,bqm->bdm", pb, sel,
                            preferred_element_type=jnp.float32)   # (BB, 4, M)

    cnt = jnp.sum(valid, axis=2, keepdims=True)           # (BB, 1, 1)
    has = (cnt > 0.0).astype(jnp.float32)                 # skip empty images
    denom = jnp.maximum(cnt, 1.0)

    # ---- F.cross_entropy: mean over matched of (logsumexp - logit[label+1])
    picked = jnp.sum(matched_lg * onehot, axis=1, keepdims=True)  # (BB, 1, M)
    mxm = jnp.max(matched_lg, axis=1, keepdims=True)
    m_lse = mxm + jnp.log(jnp.sum(jnp.exp(matched_lg - mxm), axis=1,
                                  keepdims=True))                 # (BB, 1, M)
    lcls_b = jnp.sum((m_lse - picked) * valid, axis=2, keepdims=True) / denom

    # ---- F.l1_loss: mean over all (K, 4) elements
    pcx, pcy = matched_bx[:, 0:1, :], matched_bx[:, 1:2, :]
    pw, ph = matched_bx[:, 2:3, :], matched_bx[:, 3:4, :]
    l1 = (jnp.abs(pcx - tcx) + jnp.abs(pcy - tcy)
          + jnp.abs(pw - tw) + jnp.abs(ph - th)) * valid
    l1_b = jnp.sum(l1, axis=2, keepdims=True) / (denom * 4.0)

    # ---- elementwise GIoU (bbox_iou, xywh input, GIoU=True, eps=1e-7)
    b1x1, b1x2 = pcx - 0.5 * pw, pcx + 0.5 * pw
    b1y1, b1y2 = pcy - 0.5 * ph, pcy + 0.5 * ph
    b2x1, b2x2 = tcx - 0.5 * tw, tcx + 0.5 * tw
    b2y1, b2y2 = tcy - 0.5 * th, tcy + 0.5 * th
    inter = (jnp.maximum(jnp.minimum(b1x2, b2x2) - jnp.maximum(b1x1, b2x1), 0.0)
             * jnp.maximum(jnp.minimum(b1y2, b2y2) - jnp.maximum(b1y1, b2y1), 0.0))
    union = pw * ph + tw * th - inter + _EPS
    iou = inter / union
    cw = jnp.maximum(b1x2, b2x2) - jnp.minimum(b1x1, b2x1)
    ch = jnp.maximum(b1y2, b2y2) - jnp.minimum(b1y1, b2y1)
    c_area = cw * ch + _EPS
    giou = iou - (c_area - union) / c_area
    giou_b = jnp.sum(giou * valid, axis=2, keepdims=True) / denom

    # ---- per-chunk reduction over its batches
    lcls_tot = jnp.sum(lcls_b * has)
    lbox_tot = jnp.sum((l1_b + 1.0 - giou_b) * has)
    loss_tot = lcls_tot + lbox_tot

    lane = lax.broadcasted_iota(jnp.int32, (1, 8, _LANES), 2)
    out_ref[...] = (jnp.where(lane == 0, loss_tot, 0.0)
                    + jnp.where(lane == 1, lcls_tot, 0.0)
                    + jnp.where(lane == 2, lbox_tot, 0.0)).astype(jnp.float32)


def compute_matched_losses(logits_p, boxes_p, onehot, slab, BB):
    Bp, Qp, C = logits_p.shape
    M = slab.shape[-1]
    n_chunks = Bp // BB
    kernel = functools.partial(_loss_kernel, C)
    return pl.pallas_call(
        kernel,
        out_shape=jax.ShapeDtypeStruct((n_chunks, 8, _LANES), jnp.float32),
        grid_spec=pltpu.PrefetchScalarGridSpec(
            num_scalar_prefetch=0,
            grid=(n_chunks,),
            in_specs=[
                pl.BlockSpec((BB, Qp, C), lambda b: (b, 0, 0)),
                pl.BlockSpec((BB, Qp, 4), lambda b: (b, 0, 0)),
                pl.BlockSpec((BB, C, M), lambda b: (b, 0, 0)),
                pl.BlockSpec((BB, 8, M), lambda b: (b, 0, 0)),
            ],
            out_specs=pl.BlockSpec((1, 8, _LANES), lambda b: (b, 0, 0)),
        ),
        compiler_params=pltpu.CompilerParams(
            dimension_semantics=("parallel",)),
    )(logits_p, boxes_p, onehot, slab)


# ---------------------------------------------------------------------------
# Host-side glue: target tables, exact Hungarian assignment, dispatch
# ---------------------------------------------------------------------------
def _hungarian(cost):
    """Exact min-cost assignment (Kuhn-Munkres, potentials form), O(n^2 m).

    cost: (n, m) with n <= m.  Returns, for each row, the assigned column.
    """
    cost = np.asarray(cost, np.float64)
    n, m = cost.shape
    if n == 0:
        return np.zeros((0,), np.int64)
    INF = 1e18
    u = np.zeros(n + 1)
    v = np.zeros(m + 1)
    p = np.zeros(m + 1, dtype=np.int64)
    way = np.zeros(m + 1, dtype=np.int64)
    for i in range(1, n + 1):
        p[0] = i
        j0 = 0
        minv = np.full(m + 1, INF)
        used = np.zeros(m + 1, dtype=bool)
        while True:
            used[j0] = True
            i0 = int(p[j0])
            delta = INF
            j1 = 0
            for j in range(1, m + 1):
                if not used[j]:
                    cur = cost[i0 - 1, j - 1] - u[i0] - v[j]
                    if cur < minv[j]:
                        minv[j] = cur
                        way[j] = j0
                    if minv[j] < delta:
                        delta = minv[j]
                        j1 = j
            for j in range(m + 1):
                if used[j]:
                    u[int(p[j])] += delta
                    v[j] -= delta
                else:
                    minv[j] -= delta
            j0 = j1
            if p[j0] == 0:
                break
        while True:
            j1 = int(way[j0])
            p[j0] = p[j1]
            j0 = j1
            if j0 == 0:
                break
    ans = np.zeros(n, dtype=np.int64)
    for j in range(1, m + 1):
        if p[j] != 0:
            ans[int(p[j]) - 1] = j - 1
    return ans


def _build_target_tables(targets_np, Bp, M, C):
    """Pack per-target data into one (Bp, 8, M) slab + a (Bp, C, M) one-hot."""
    slab = np.zeros((Bp, 8, M), np.float32)      # 0-3 tbox, 4 valid, 5 row idx
    onehot = np.zeros((Bp, C, M), np.float32)    # one-hot of (label + 1)
    counts = [0] * Bp
    for b in range(Bp):
        tb = targets_np[targets_np[:, 0] == b]
        m = min(tb.shape[0], M)
        counts[b] = m
        if m:
            slab[b, 0:4, :m] = tb[:m, 2:6].T
            lab1 = np.clip(tb[:m, 1].astype(np.int64) + 1, 0, C - 1)
            onehot[b, lab1, np.arange(m)] = 1.0
    return slab, onehot, counts


def detr_compute_loss(pred_logits, pred_boxes, targets):
    pred_logits = jnp.asarray(pred_logits, jnp.float32)
    pred_boxes = jnp.asarray(pred_boxes, jnp.float32)
    targets_np = np.asarray(jax.device_get(targets), np.float32).reshape(-1, 6)
    B, Q, C = pred_logits.shape

    # ---- padded / tiled shapes ---------------------------------------------
    counts_all = [int(np.sum(targets_np[:, 0] == b)) for b in range(B)]
    maxm = max([1] + counts_all)
    M = ((maxm + _LANES - 1) // _LANES) * _LANES   # lane-dense target dim
    TM = _LANES                                    # M tile (bounds VMEM on v7x)

    # batch chunk: keep >= 2 grid steps when B >= 2 so both v7x TCs get work
    BB = max(1, min(8, B // 2)) if B >= 2 else 1
    Bp = ((B + BB - 1) // BB) * BB

    TQ = min(32, ((Q + 7) // 8) * 8)               # Q tile (multiple of 8)
    Qp = ((Q + TQ - 1) // TQ) * TQ

    logits_p, boxes_p = pred_logits, pred_boxes
    if Bp > B or Qp > Q:
        logits_p = jnp.pad(logits_p, ((0, Bp - B), (0, Qp - Q), (0, 0)))
        boxes_p = jnp.pad(boxes_p, ((0, Bp - B), (0, Qp - Q), (0, 0)))

    slab_np, onehot_np, counts = _build_target_tables(targets_np, Bp, M, C)
    onehot = jnp.asarray(onehot_np)

    # ---- matcher cost matrix (Pallas) --------------------------------------
    cost = compute_cost_matrix(logits_p, boxes_p, onehot,
                               jnp.asarray(slab_np), BB, TQ, TM)
    cost_np = np.asarray(jax.device_get(cost[:B, :Q, :maxm]))

    # ---- exact assignment on host; only tiny index/valid rows go back ------
    # TODO(synk): the Hungarian LAP is a combinatorial algorithm with no clean
    # Pallas equivalent; it is solved exactly on the host (O(n^3)) from the
    # Pallas-computed cost matrix.
    for b in range(B):
        m = min(counts[b], Q)                      # can't match more than Q
        if m == 0:
            continue
        rows = _hungarian(cost_np[b, :, :m].T)     # query index per target
        slab_np[b, 4, :m] = 1.0
        slab_np[b, 5, :m] = rows.astype(np.float32)

    # ---- matched-pair losses (Pallas), partial row per batch chunk ---------
    partials = compute_matched_losses(logits_p, boxes_p, onehot,
                                      jnp.asarray(slab_np), BB)
    totals = jnp.sum(partials[:, 0, :], axis=0)    # tiny final sum over chunks
    return totals[0], totals[1], totals[2]


class DETRTargetPallas:
    """JAX/Pallas port of DETRTarget (cost_class = cost_bbox = cost_giou = 1)."""

    def __init__(self, cfg=None):
        self.cost_class = 1.0
        self.cost_bbox = 1.0
        self.cost_giou = 1.0

    def __call__(self, preds, targets):
        if targets is None:
            return preds
        loss, lcls, lbox = detr_compute_loss(
            preds["pred_logits"], preds["pred_boxes"], targets)
        return {"loss": loss, "lbox": float(lbox), "lcls": float(lcls)}


# ---------------------------------------------------------------------------
# Pure numpy reference of the same math (for the self-check in __main__)
# ---------------------------------------------------------------------------
def _numpy_reference(logits_all, boxes_all, targets_np):
    logits_all = np.asarray(logits_all, np.float64)
    boxes_all = np.asarray(boxes_all, np.float64)
    B, Q, C = logits_all.shape
    lcls_tot = 0.0
    lbox_tot = 0.0
    for b in range(B):
        tb = targets_np[targets_np[:, 0] == b]
        m = min(tb.shape[0], Q)
        if m == 0:
            continue
        lab1 = tb[:m, 1].astype(np.int64) + 1
        tbox = tb[:m, 2:6].astype(np.float64)
        lg, pb = logits_all[b], boxes_all[b]

        e = np.exp(lg - lg.max(-1, keepdims=True))
        prob = e / e.sum(-1, keepdims=True)
        cls_cost = -prob[:, lab1]
        l1 = np.abs(pb[:, None, :] - tbox[None, :, :]).sum(-1)
        px1, py1 = pb[:, 0] - pb[:, 2] / 2, pb[:, 1] - pb[:, 3] / 2
        px2, py2 = pb[:, 0] + pb[:, 2] / 2, pb[:, 1] + pb[:, 3] / 2
        tx1, ty1 = tbox[:, 0] - tbox[:, 2] / 2, tbox[:, 1] - tbox[:, 3] / 2
        tx2, ty2 = tbox[:, 0] + tbox[:, 2] / 2, tbox[:, 1] + tbox[:, 3] / 2
        iw = np.maximum(np.minimum(px2[:, None], tx2[None, :])
                        - np.maximum(px1[:, None], tx1[None, :]), 0.0)
        ih = np.maximum(np.minimum(py2[:, None], ty2[None, :])
                        - np.maximum(py1[:, None], ty1[None, :]), 0.0)
        inter = iw * ih
        union = ((pb[:, 2] * pb[:, 3])[:, None]
                 + (tbox[:, 2] * tbox[:, 3])[None, :] - inter)
        iou = inter / (union + _EPS)
        cw = (np.maximum(px2[:, None], tx2[None, :])
              - np.minimum(px1[:, None], tx1[None, :]))
        ch = (np.maximum(py2[:, None], ty2[None, :])
              - np.minimum(py1[:, None], ty1[None, :]))
        ca = cw * ch
        giou = iou - (ca - union) / (ca + _EPS)
        cost = l1 + cls_cost - giou
        rows = _hungarian(cost.T)

        sl = lg[rows]
        mx = sl.max(-1)
        lse = mx + np.log(np.exp(sl - mx[:, None]).sum(-1))
        lcls = float(np.mean(lse - sl[np.arange(m), lab1]))
        sb = pb[rows]
        l1l = float(np.mean(np.abs(sb - tbox)))
        bx1, by1 = sb[:, 0] - sb[:, 2] / 2, sb[:, 1] - sb[:, 3] / 2
        bx2, by2 = sb[:, 0] + sb[:, 2] / 2, sb[:, 1] + sb[:, 3] / 2
        iw = np.maximum(np.minimum(bx2, tx2) - np.maximum(bx1, tx1), 0.0)
        ih = np.maximum(np.minimum(by2, ty2) - np.maximum(by1, ty1), 0.0)
        inter = iw * ih
        union = sb[:, 2] * sb[:, 3] + tbox[:, 2] * tbox[:, 3] - inter + _EPS
        iou = inter / union
        cw = np.maximum(bx2, tx2) - np.minimum(bx1, tx1)
        ch = np.maximum(by2, ty2) - np.minimum(by1, ty1)
        ca = cw * ch + _EPS
        g = iou - (ca - union) / ca
        lbox = l1l + 1.0 - float(np.mean(g))
        lcls_tot += lcls
        lbox_tot += lbox
    return lcls_tot + lbox_tot, lcls_tot, lbox_tot


if __name__ == "__main__":
    key = jax.random.PRNGKey(0)
    B, Q, NUM_CLASSES = 2, 8, 5
    C = NUM_CLASSES + 1  # +1 background class at index 0

    k1, k2, k3, k4, k5 = jax.random.split(key, 5)
    pred_logits = jax.random.normal(k1, (B, Q, C), jnp.float32)
    pred_boxes = jax.nn.sigmoid(jax.random.normal(k2, (B, Q, 4), jnp.float32))

    # targets: [batch_idx, class, cx, cy, w, h]
    n_t = 5
    batch_idx = jnp.array([0.0, 0.0, 0.0, 1.0, 1.0], jnp.float32)[:, None]
    cls = jax.random.randint(k3, (n_t, 1), 0, NUM_CLASSES).astype(jnp.float32)
    cxcy = jax.random.uniform(k4, (n_t, 2), minval=0.25, maxval=0.75)
    wh = jax.random.uniform(k5, (n_t, 2), minval=0.10, maxval=0.30)
    targets = jnp.concatenate([batch_idx, cls, cxcy, wh], axis=-1)

    model = DETRTargetPallas(cfg=None)
    preds = {"pred_logits": pred_logits, "pred_boxes": pred_boxes}

    # targets=None path returns preds unchanged
    assert model(preds, None) is preds

    losses = model(preds, targets)
    loss = jax.block_until_ready(losses["loss"])
    assert np.isfinite(float(loss))
    assert np.isfinite(losses["lcls"]) and np.isfinite(losses["lbox"])

    # numerical self-check against a pure-numpy reference of the same math
    ref_loss, ref_lcls, ref_lbox = _numpy_reference(
        np.asarray(pred_logits), np.asarray(pred_boxes),
        np.asarray(targets, np.float32))
    assert abs(float(loss) - ref_loss) <= 5e-2 + 5e-2 * abs(ref_loss), \
        (float(loss), ref_loss)
    assert abs(losses["lcls"] - ref_lcls) <= 5e-2 + 5e-2 * abs(ref_lcls)
    assert abs(losses["lbox"] - ref_lbox) <= 5e-2 + 5e-2 * abs(ref_lbox)

    print("KERNEL_OK")
</pallas_src>

<mosaic_0001>
module attributes {stable_mosaic.version = 11 : i64} {
  func.func @_cost_kernel(%arg0: i32, %arg1: i32, %arg2: i32, %arg3: memref<1x8x6xf32, #tpu.memory_space<vmem>>, %arg4: memref<1x8x4xf32, #tpu.memory_space<vmem>>, %arg5: memref<1x6x128xf32, #tpu.memory_space<vmem>>, %arg6: memref<1x8x128xf32, #tpu.memory_space<vmem>>, %arg7: memref<1x8x128xf32, #tpu.memory_space<vmem>>) attributes {dimension_semantics = [#tpu.dimension_semantics<parallel>, #tpu.dimension_semantics<parallel>, #tpu.dimension_semantics<arbitrary>], iteration_bounds = array<i64: 2, 1, 1>, scalar_prefetch = 0 : i64, scratch_operands = 0 : i64, tpu.core_type = #tpu.core_type<tc>, window_params = [{transform_indices = @transform_0, window_bounds = array<i64: 1, 8, 6>}, {transform_indices = @transform_1, window_bounds = array<i64: 1, 8, 4>}, {transform_indices = @transform_2, window_bounds = array<i64: 1, 6, 128>}, {transform_indices = @transform_3, window_bounds = array<i64: 1, 8, 128>}, {transform_indices = @transform_4, window_bounds = array<i64: 1, 8, 128>}]} {
    %c0 = arith.constant 0 : index
    %c0_0 = arith.constant 0 : index
    %c0_1 = arith.constant 0 : index
    %0 = vector.load %arg3[%c0, %c0_0, %c0_1] : memref<1x8x6xf32, #tpu.memory_space<vmem>>, vector<1x8x6xf32>
    %c0_2 = arith.constant 0 : index
    %c0_3 = arith.constant 0 : index
    %c0_4 = arith.constant 0 : index
    %1 = vector.load %arg4[%c0_2, %c0_3, %c0_4] : memref<1x8x4xf32, #tpu.memory_space<vmem>>, vector<1x8x4xf32>
    %c0_5 = arith.constant 0 : index
    %c0_6 = arith.constant 0 : index
    %c0_7 = arith.constant 0 : index
    %2 = vector.load %arg5[%c0_5, %c0_6, %c0_7] : memref<1x6x128xf32, #tpu.memory_space<vmem>>, vector<1x6x128xf32>
    %c0_8 = arith.constant 0 : index
    %c0_9 = arith.constant 0 : index
    %c0_10 = arith.constant 0 : index
    %3 = vector.load %arg6[%c0_8, %c0_9, %c0_10] : memref<1x8x128xf32, #tpu.memory_space<vmem>>, vector<1x8x128xf32>
    %cst = arith.constant dense<0xFF800000> : vector<1x8xf32>
    %4 = vector.multi_reduction <maximumf>, %0, %cst [2] : vector<1x8x6xf32> to vector<1x8xf32>
    %5 = vector.shape_cast %4 : vector<1x8xf32> to vector<1x8x1xf32>
    %6 = vector.broadcast %5 : vector<1x8x1xf32> to vector<1x8x6xf32>
    %7 = arith.subf %0, %6 : vector<1x8x6xf32>
    %8 = math.exp %7 : vector<1x8x6xf32>
    %cst_11 = arith.constant dense<0.000000e+00> : vector<1x8xf32>
    %9 = vector.multi_reduction <add>, %8, %cst_11 [2] : vector<1x8x6xf32> to vector<1x8xf32>
    %10 = vector.shape_cast %9 : vector<1x8xf32> to vector<1x8x1xf32>
    %11 = vector.broadcast %10 : vector<1x8x1xf32> to vector<1x8x6xf32>
    %12 = arith.divf %8, %11 : vector<1x8x6xf32>
    "tpu.trace_start"() <{level = 10 : i32, message = "bqc,bcm->bqm"}> : () -> ()
    %cst_12 = arith.constant dense<0.000000e+00> : vector<1x8x128xf32>
    %13 = tpu.matmul %12, %2, %cst_12 {dimension_numbers = #tpu.dot_dimension_numbers<[2], [1], [1], [2], [0, 0, 0, 1, 1, 2], [0], [0]>} : vector<1x8x6xf32>, vector<1x6x128xf32>, vector<1x8x128xf32> -> vector<1x8x128xf32>
    "tpu.trace_stop"() : () -> ()
    %14 = vector.extract_strided_slice %1 {offsets = [0, 0, 0], sizes = [1, 8, 1], strides = [1, 1, 1]} : vector<1x8x4xf32> to vector<1x8x1xf32>
    %15 = vector.extract_strided_slice %1 {offsets = [0, 0, 1], sizes = [1, 8, 1], strides = [1, 1, 1]} : vector<1x8x4xf32> to vector<1x8x1xf32>
    %16 = vector.extract_strided_slice %1 {offsets = [0, 0, 2], sizes = [1, 8, 1], strides = [1, 1, 1]} : vector<1x8x4xf32> to vector<1x8x1xf32>
    %17 = vector.extract_strided_slice %1 {offsets = [0, 0, 3], sizes = [1, 8, 1], strides = [1, 1, 1]} : vector<1x8x4xf32> to vector<1x8x1xf32>
    %18 = vector.extract_strided_slice %3 {offsets = [0, 0, 0], sizes = [1, 1, 128], strides = [1, 1, 1]} : vector<1x8x128xf32> to vector<1x1x128xf32>
    %19 = vector.extract_strided_slice %3 {offsets = [0, 1, 0], sizes = [1, 1, 128], strides = [1, 1, 1]} : vector<1x8x128xf32> to vector<1x1x128xf32>
    %20 = vector.extract_strided_slice %3 {offsets = [0, 2, 0], sizes = [1, 1, 128], strides = [1, 1, 1]} : vector<1x8x128xf32> to vector<1x1x128xf32>
    %21 = vector.extract_strided_slice %3 {offsets = [0, 3, 0], sizes = [1, 1, 128], strides = [1, 1, 1]} : vector<1x8x128xf32> to vector<1x1x128xf32>
    %22 = vector.broadcast %14 : vector<1x8x1xf32> to vector<1x8x128xf32>
    %23 = vector.broadcast %18 : vector<1x1x128xf32> to vector<1x8x128xf32>
    %24 = arith.subf %22, %23 : vector<1x8x128xf32>
    %25 = math.absf %24 : vector<1x8x128xf32>
    %26 = vector.broadcast %15 : vector<1x8x1xf32> to vector<1x8x128xf32>
    %27 = vector.broadcast %19 : vector<1x1x128xf32> to vector<1x8x128xf32>
    %28 = arith.subf %26, %27 : vector<1x8x128xf32>
    %29 = math.absf %28 : vector<1x8x128xf32>
    %30 = arith.addf %25, %29 : vector<1x8x128xf32>
    %31 = vector.broadcast %16 : vector<1x8x1xf32> to vector<1x8x128xf32>
    %32 = vector.broadcast %20 : vector<1x1x128xf32> to vector<1x8x128xf32>
    %33 = arith.subf %31, %32 : vector<1x8x128xf32>
    %34 = math.absf %33 : vector<1x8x128xf32>
    %35 = arith.addf %30, %34 : vector<1x8x128xf32>
    %36 = vector.broadcast %17 : vector<1x8x1xf32> to vector<1x8x128xf32>
    %37 = vector.broadcast %21 : vector<1x1x128xf32> to vector<1x8x128xf32>
    %38 = arith.subf %36, %37 : vector<1x8x128xf32>
    %39 = math.absf %38 : vector<1x8x128xf32>
    %40 = arith.addf %35, %39 : vector<1x8x128xf32>
    %cst_13 = arith.constant 5.000000e-01 : f32
    %41 = vector.broadcast %cst_13 : f32 to vector<1x8x1xf32>
    %42 = arith.mulf %41, %16 : vector<1x8x1xf32>
    %43 = arith.subf %14, %42 : vector<1x8x1xf32>
    %cst_14 = arith.constant 5.000000e-01 : f32
    %44 = vector.broadcast %cst_14 : f32 to vector<1x8x1xf32>
    %45 = arith.mulf %44, %17 : vector<1x8x1xf32>
    %46 = arith.subf %15, %45 : vector<1x8x1xf32>
    %cst_15 = arith.constant 5.000000e-01 : f32
    %47 = vector.broadcast %cst_15 : f32 to vector<1x8x1xf32>
    %48 = arith.mulf %47, %16 : vector<1x8x1xf32>
    %49 = arith.addf %14, %48 : vector<1x8x1xf32>
    %cst_16 = arith.constant 5.000000e-01 : f32
    %50 = vector.broadcast %cst_16 : f32 to vector<1x8x1xf32>
    %51 = arith.mulf %50, %17 : vector<1x8x1xf32>
    %52 = arith.addf %15, %51 : vector<1x8x1xf32>
    %cst_17 = arith.constant 5.000000e-01 : f32
    %53 = vector.broadcast %cst_17 : f32 to vector<1x1x128xf32>
    %54 = arith.mulf %53, %20 : vector<1x1x128xf32>
    %55 = arith.subf %18, %54 : vector<1x1x128xf32>
    %cst_18 = arith.constant 5.000000e-01 : f32
    %56 = vector.broadcast %cst_18 : f32 to vector<1x1x128xf32>
    %57 = arith.mulf %56, %21 : vector<1x1x128xf32>
    %58 = arith.subf %19, %57 : vector<1x1x128xf32>
    %cst_19 = arith.constant 5.000000e-01 : f32
    %59 = vector.broadcast %cst_19 : f32 to vector<1x1x128xf32>
    %60 = arith.mulf %59, %20 : vector<1x1x128xf32>
    %61 = arith.addf %18, %60 : vector<1x1x128xf32>
    %cst_20 = arith.constant 5.000000e-01 : f32
    %62 = vector.broadcast %cst_20 : f32 to vector<1x1x128xf32>
    %63 = arith.mulf %62, %21 : vector<1x1x128xf32>
    %64 = arith.addf %19, %63 : vector<1x1x128xf32>
    %65 = vector.broadcast %49 : vector<1x8x1xf32> to vector<1x8x128xf32>
    %66 = vector.broadcast %61 : vector<1x1x128xf32> to vector<1x8x128xf32>
    %67 = arith.minimumf %65, %66 : vector<1x8x128xf32>
    %68 = vector.broadcast %43 : vector<1x8x1xf32> to vector<1x8x128xf32>
    %69 = vector.broadcast %55 : vector<1x1x128xf32> to vector<1x8x128xf32>
    %70 = arith.maximumf %68, %69 : vector<1x8x128xf32>
    %71 = arith.subf %67, %70 : vector<1x8x128xf32>
    %cst_21 = arith.constant 0.000000e+00 : f32
    %72 = vector.broadcast %cst_21 : f32 to vector<1x8x128xf32>
    %73 = arith.maximumf %71, %72 : vector<1x8x128xf32>
    %74 = vector.broadcast %52 : vector<1x8x1xf32> to vector<1x8x128xf32>
    %75 = vector.broadcast %64 : vector<1x1x128xf32> to vector<1x8x128xf32>
    %76 = arith.minimumf %74, %75 : vector<1x8x128xf32>
    %77 = vector.broadcast %46 : vector<1x8x1xf32> to vector<1x8x128xf32>
    %78 = vector.broadcast %58 : vector<1x1x128xf32> to vector<1x8x128xf32>
    %79 = arith.maximumf %77, %78 : vector<1x8x128xf32>
    %80 = arith.subf %76, %79 : vector<1x8x128xf32>
    %cst_22 = arith.constant 0.000000e+00 : f32
    %81 = vector.broadcast %cst_22 : f32 to vector<1x8x128xf32>
    %82 = arith.maximumf %80, %81 : vector<1x8x128xf32>
    %83 = arith.mulf %73, %82 : vector<1x8x128xf32>
    %84 = arith.mulf %16, %17 : vector<1x8x1xf32>
    %85 = arith.mulf %20, %21 : vector<1x1x128xf32>
    %86 = vector.broadcast %84 : vector<1x8x1xf32> to vector<1x8x128xf32>
    %87 = vector.broadcast %85 : vector<1x1x128xf32> to vector<1x8x128xf32>
    %88 = arith.addf %86, %87 : vector<1x8x128xf32>
    %89 = arith.subf %88, %83 : vector<1x8x128xf32>
    %cst_23 = arith.constant 1.000000e-07 : f32
    %90 = vector.broadcast %cst_23 : f32 to vector<1x8x128xf32>
    %91 = arith.addf %89, %90 : vector<1x8x128xf32>
    %92 = arith.divf %83, %91 : vector<1x8x128xf32>
    %93 = vector.broadcast %49 : vector<1x8x1xf32> to vector<1x8x128xf32>
    %94 = vector.broadcast %61 : vector<1x1x128xf32> to vector<1x8x128xf32>
    %95 = arith.maximumf %93, %94 : vector<1x8x128xf32>
    %96 = vector.broadcast %43 : vector<1x8x1xf32> to vector<1x8x128xf32>
    %97 = vector.broadcast %55 : vector<1x1x128xf32> to vector<1x8x128xf32>
    %98 = arith.minimumf %96, %97 : vector<1x8x128xf32>
    %99 = arith.subf %95, %98 : vector<1x8x128xf32>
    %100 = vector.broadcast %52 : vector<1x8x1xf32> to vector<1x8x128xf32>
    %101 = vector.broadcast %64 : vector<1x1x128xf32> to vector<1x8x128xf32>
    %102 = arith.maximumf %100, %101 : vector<1x8x128xf32>
    %103 = vector.broadcast %46 : vector<1x8x1xf32> to vector<1x8x128xf32>
    %104 = vector.broadcast %58 : vector<1x1x128xf32> to vector<1x8x128xf32>
    %105 = arith.minimumf %103, %104 : vector<1x8x128xf32>
    %106 = arith.subf %102, %105 : vector<1x8x128xf32>
    %107 = arith.mulf %99, %106 : vector<1x8x128xf32>
    %108 = arith.subf %107, %89 : vector<1x8x128xf32>
    %cst_24 = arith.constant 1.000000e-07 : f32
    %109 = vector.broadcast %cst_24 : f32 to vector<1x8x128xf32>
    %110 = arith.addf %107, %109 : vector<1x8x128xf32>
    %111 = arith.divf %108, %110 : vector<1x8x128xf32>
    %112 = arith.subf %92, %111 : vector<1x8x128xf32>
    %113 = arith.subf %40, %112 : vector<1x8x128xf32>
    %114 = arith.subf %113, %13 : vector<1x8x128xf32>
    %c0_25 = arith.constant 0 : index
    %c0_26 = arith.constant 0 : index
    %c0_27 = arith.constant 0 : index
    %115 = vector.load %arg7[%c0_25, %c0_26, %c0_27] : memref<1x8x128xf32, #tpu.memory_space<vmem>>, vector<1x8x128xf32>
    tpu.vector_store %arg7[%c0_25, %c0_26, %c0_27], %114 {strides = array<i32>} : memref<1x8x128xf32, #tpu.memory_space<vmem>>, vector<1x8x128xf32>,
    return
  }
  func.func @transform_0(%arg0: i32, %arg1: i32, %arg2: i32) -> (i32, i32, i32) {
    %c0_i32 = arith.constant 0 : i32
    %c0_i32_0 = arith.constant 0 : i32
    return %arg0, %arg1, %c0_i32 : i32, i32, i32
  }
  func.func @transform_1(%arg0: i32, %arg1: i32, %arg2: i32) -> (i32, i32, i32) {
    %c0_i32 = arith.constant 0 : i32
    %c0_i32_0 = arith.constant 0 : i32
    return %arg0, %arg1, %c0_i32 : i32, i32, i32
  }
  func.func @transform_2(%arg0: i32, %arg1: i32, %arg2: i32) -> (i32, i32, i32) {
    %c0_i32 = arith.constant 0 : i32
    %c0_i32_0 = arith.constant 0 : i32
    return %arg0, %c0_i32, %arg2 : i32, i32, i32
  }
  func.func @transform_3(%arg0: i32, %arg1: i32, %arg2: i32) -> (i32, i32, i32) {
    %c0_i32 = arith.constant 0 : i32
    %c0_i32_0 = arith.constant 0 : i32
    return %arg0, %c0_i32, %arg2 : i32, i32, i32
  }
  func.func @transform_4(%arg0: i32, %arg1: i32, %arg2: i32) -> (i32, i32, i32) {
    %c0_i32 = arith.constant 0 : i32
    return %arg0, %arg1, %arg2 : i32, i32, i32
  }
}

</mosaic_0001>

<bundles_post_ra>
// kernel: tpu_custom_call.1
= control target key start
LH: loop header
LB: loop body
LE: loop exit
PB: predicated region body
PF: predicated region fallthrough
CT: control target
= control target key end

     0   :  { %9 = vsyncpa [#allocation3], 0  ;;  %s984_s0 = inlined_call_operand.vmem [shape: f32[2,8,6], index: 0, kind: input, shape index: {}]   ;;  %s985_s1 = inlined_call_operand.vmem [shape: f32[2,8,4], index: 1, kind: input, shape index: {}]   ;;  %s986_s2 = inlined_call_operand.vmem [shape: f32[2,6,128], index: 2, kind: input, shape index: {}]   ;;  %s987_s3 = inlined_call_operand.vmem [shape: f32[2,8,128], index: 3, kind: input, shape index: {}]   ;;  %s988_s4 = inlined_call_operand.hbm [shape: f32[2,8,128], index: 4, kind: output, shape index: {}]  }
   0x1   :  { %11 = vsyncpa [#allocation3 + $0x1], 0  ;;  %s846_s15 = smov 0   ;;  %s848_s16 = smov 0  }
   0x2   :  { %s850_s17 = smov 0   ;;  %s852_s18 = smov 0  }
   0x3   :  { %s854_s19 = smov 0   ;;  %s856_s20 = smov 0  }
   0x4 LB: > { %s641_s21 = sadd.s32 4294967295, %s813_s20   ;;  %s642_s22 = sadd.s32 4294967294, %s813_s20   ;;  %s813_s20 = sphi %s856_s20, %s17_s20   ;;  %s809_s19 = sphi %s854_s19, %s999_s19   ;;  %s805_s18 = sphi %s852_s18, %s998_s18   ;;  %s801_s17 = sphi %s850_s17, %s997_s17   ;;  %s797_s16 = sphi %s848_s16, %s996_s16   ;;  %s793_s15 = sphi %s846_s15, %s995_s15  }
   0x5   : > { %s36_s23 = sadd.s32 1, %s809_s19  ;;  %s159_s24 = sadd.s32 1, %s801_s17 }
   0x6   : > { %p38_p0 = scmp.ge.s32.totalorder %s36_s23, 2  ;;  %p169_p1 = scmp.ne.s32.totalorder %s801_s17, %s797_s16 }
   0x7   : > { %p170_p2 = scmp.eq.s32.totalorder %s641_s21, 1  ;;  %p175_p3 = scmp.ne.s32.totalorder %s797_s16, %s793_s15 }
   0x8   : > { %s1001_s23 = smov (%p38_p0, %s36_s23), 0  ;;  %p176_p5 = scmp.eq.s32.totalorder %s642_s22, 1 }
   0x9   : > { %p886_p4 = por %p170_p2, %p169_p1  ;;  %s152_s26 = ssub.s32 %s809_s19, %s1001_s23 }
   0xa   : > { %p645_p6 = scmp.ge.s32.totalorder %s813_s20, 1  ;;  %p157_p7 = scmp.eq.s32.totalorder %s152_s26, 0 }
   0xb   : > { %p893_p8 = por %p176_p5, %p175_p3  ;;  %p234_p9 = scmp.lt.s32.totalorder %s813_s20, 3 }
   0xc   : > { %s899_s28 = scalar_select %p157_p7, %s801_s17, %s159_s24  }
   0xd   : > { %p235_p10 = pnand %p645_p6, %p234_p9 }
   0xe   : > { %p283_p11 = scmp.lt.s32.totalorder (!%p235_p10), %s805_s18, 1  ;;  %s815_s11 = smov (!%p235_p10), 126  }
   0xf   : > { %238 = sbr.rel (%p235_p10) target bundleno = 420 (0x1a4), region = 36  ;;  %s816_s12 = smov (!%p235_p10), 127  }
  0x10   : > { %s654_s5 = sshll.u32 (!%p235_p10), %s805_s18, 3  ;;  %s755_s22 = scalar_lea.hbm (!%p235_p10), %s988_s4, 16 }
  0x11   : > { %s516_s8 = scalar_lea.hbm (!%p235_p10), %s988_s4, %s654_s5 }
  0x14   : > { %s284_s29 = scalar_select %p283_p11, %s805_s18, 1  ;;  %vm315_vm0 = vcmask 48128   ;;  %v817_v4 = vmov 1   ;;  %v818_v10 = vmov 0   ;;  %v819_v16 = vmov 2  }
  0x15   : > { %720 = vset.pattern.permute.xlu1 %v817_v4  ;;  %719 = vset.pattern.permute.xlu0 %v817_v4  ;;  %v820_v17 = vmov 3   ;;  %vm343_vm1 = vcmask 1045504  }
  0x16   : > { %s903_s30 = sshll.u32 %s284_s29, 3  ;;  %718 = vset.pattern.permute.xlu2 %v818_v10  ;;  %s280_s29 = sand.u32 1, %s797_s16  }
  0x17   : > { %s289_s7 = scalar_lea.vmem %s984_s0, %s903_s30  ;;  %s296_s10 = scalar_lea.vmem %s985_s1, %s903_s30 }
  0x18   : > { %v311_v0 = vld [vmem:[%s289_s7] sm:$0xff]  ;;  %s303_s21 = scalar_lea.vmem %s986_s2, %s903_s30  ;;  %s310_s26 = scalar_lea.vmem %s987_s3, %s903_s30 }
  0x19   : > { %v312_v1 = vld [vmem:[%s296_s10] sm:$0xff]  ;;  %v316_v2 = vsel %vm315_vm0, %v311_v0, -inf  ;;  %s646_s30 = sshll.u32 %s280_s29, 3 }
  0x1a   : > { %v399_v3 = vmul.f32 0.5, %v312_v1  ;;  %317 = vmax.xlane.f32.xlu0 %v316_v2  ;;  %v313_v18 = vld [vmem:[%s303_s21] sm:$0x3f]  ;;  %s282_s9 = scalar_lea.vmem [#allocation2], %s646_s30 }
  0x1b   : > { %651 = vmatpush.msk.msra.mxu0 %vm343_vm1, %v313_v18  ;;  %v924_v31 = vld [vmem:[%s310_s26] sm:$0xff]  ;;  %s518_s10 = sshll.u32 %s282_s9, 4  ;;  %s519_s10 = int_to_ptr.vmem [resolvable:$true] %s518_s10 }
  0x1c   : > { %401 = vrot.lane.b32.xlu1 %v399_v3, %s815_s11  ;;  %v406_v32 = vmul.f32 0.5, %v924_v31  ;;  %v448_v48 = vrot.slane %v924_v31, 1  ;;  %s520_s11 = sshll.u32 %s516_s8, 4  ;;  %s521_s11 = int_to_ptr.hbm [resolvable:$true] %s520_s11 }
  0x1d   : > { %s749_s13 = sshra.s32 %s521_s11, 4  ;;  %s750_s13 = int_to_ptr.hbm [resolvable:$true] %s749_s13 }
  0x1e   : > { %v408_v33 = vrot.slane %v406_v32, 2  ;;  %v450_v51 = vmul.f32 %v448_v48, %v924_v31  ;;  %v395_v32 = vperm.slane %v924_v31, 3  ;;  %s751_s18 = scalar_lea.hbm %s750_s13, 8  ;;  %p756_p1 = scmp.lt.s32.totalorder %s750_s13, %s988_s4 }
  0x1f   : > { %p752_p12 = scmp.ne.s32.totalorder %s750_s13, %s751_s18  ;;  %p757_p2 = scmp.lt.s32.totalorder %s755_s22, %s751_s18 }
  0x20   : > { %v411_v35 = vadd.f32 %v408_v33, %v924_v31  ;;  %v410_v36 = vsub.f32 %v924_v31, %v408_v33  ;;  %v456_v58 = vperm.slane %v450_v51, 2 }
  0x21   : > { %p753_p13 = pnand %p752_p12, %p886_p4  ;;  %p758_p3 = por %p757_p2, %p756_p1 }
  0x22   : > { %v417_v37 = vperm.slane %v411_v35, 0  ;;  %v424_v38 = vperm.slane %v410_v36, 0  ;;  %v438_v39 = vperm.slane %v410_v36, 1  ;;  %v432_v40 = vperm.slane %v411_v35, 1 }
  0x23   : > { %p754_p0 = pneg %p753_p13 }
  0x24   : > { %443 = vrot.lane.b32.xlu1 %v312_v1, %s816_s12  ;;  %s504_s12 = scalar_lea.sflag [#allocation3], %s280_s29 }
  0x25   : > { %p759_p5 = pnand %p758_p3, %p754_p0 }
  0x8d   : > { %v318_v5 = vpop.xlane.xlu0 %317 }
  0x8e   : > { %v402_v6 = vpop.permute.xlu1 %401  ;;  %v319_v7 = vsub.f32 %v311_v0, %v318_v5 }
  0x8f   : > { %v404_v8 = vsub.f32 %v312_v1, %v402_v6  ;;  %v405_v9 = vadd.f32 %v402_v6, %v312_v1 }
  0x90   : > { %v320_v11 = vmul.f32 1.442695, %v319_v7 }
  0x91   : > { %435 = vperm.xlu1 %720, %v404_v8   ;;  %414 = vperm.xlu2 %718, %v405_v9  }
  0x92   : > { %727 = vpow2.f32 %v320_v11 }
  0x96   : > { %v444_v14 = vpop.permute.xlu1 %443 }
  0x97   : > { %v446_v15 = vmul.f32 %v444_v14, %v312_v1 }
  0x98   : > { %v728_v12 = vpop.eup %727 }
  0x99   : > { %722 = vset.pattern.permute.xlu1 %v818_v10  ;;  %421 = vperm.xlu2 %718, %v404_v8   ;;  %v322_v13 = vsel %vm315_vm0, %v728_v12, 0.0 }
  0x9a   : > { %369 = vperm.xlu1 %722, %v312_v1   ;;  %323 = vadd.xlane.f32.xlu0 %v322_v13  ;;  %v379_v13 = vperm.slane %v924_v31, 1 }
  0xa1   : > { %721 = vset.pattern.permute.xlu2 %v819_v16 }
  0xa2   : > { %724 = vset.pattern.permute.xlu1 %v819_v16  ;;  %453 = vperm.xlu2 %721, %v446_v15  }
  0xa3   : > { %384 = vperm.xlu1 %724, %v312_v1  }
  0xaa   : > { %723 = vset.pattern.permute.xlu2 %v817_v4 }
  0xab   : > { %376 = vperm.xlu2 %723, %v312_v1  }
  0xae   : > { %429 = vperm.xlu0 %719, %v405_v9  }
  0xb3   : > { %725 = vset.pattern.permute.xlu2 %v820_v17 }
  0xb4   : > { %392 = vperm.xlu2 %725, %v312_v1  }
  0xb6   : > { %726 = vset.pattern.permute.xlu0 %v819_v16  ;;  %v387_v16 = vperm.slane %v924_v31, 2 }
  0xeb   : > { %v415_v34 = vpop.permute.xlu2 %414 }
  0xec   : > { %v418_v43 = vmin.f32 %v415_v34, %v417_v37  ;;  %v475_v52 = vmax.f32 %v415_v34, %v417_v37 }
  0xf3   : > { %v422_v44 = vpop.permute.xlu2 %421 }
  0xf4   : > { %v425_v45 = vmax.f32 %v422_v44, %v424_v38  ;;  %v476_v53 = vmin.f32 %v422_v44, %v424_v38 }
  0xf6   : > { %v426_v49 = vsub.f32 %v418_v43, %v425_v45  ;;  %v477_v60 = vsub.f32 %v475_v52, %v476_v53 }
  0xf8   : > { %v427_v56 = vmax.f32 %v426_v49, 0.0 }
  0xfc   : > { %v454_v59 = vpop.permute.xlu2 %453 }
  0xfd   : > { %v457_v63 = vadd.f32 %v456_v58, %v454_v59 }
 0x103   : > { %v436_v41 = vpop.permute.xlu1 %435 }
 0x104   : > { %v439_v46 = vmax.f32 %v436_v41, %v438_v39  ;;  %v479_v54 = vmin.f32 %v436_v41, %v438_v39 }
 0x105   : > { %v377_v11 = vpop.permute.xlu2 %376 }
 0x106   : > { %v380_v18 = vsub.f32 %v377_v11, %v379_v13 }
 0x10c   : > { %v370_v8 = vpop.permute.xlu1 %369 }
 0x10d   : > { %v324_v19 = vpop.xlane.xlu0 %323 }
 0x10e   : > { %729 = vrcp.f32 %v324_v19  ;;  %v336_v23 = vand.u32 2147483648, %v324_v19  ;;  %v334_v25 = vand.u32 2147483647, %v324_v19  ;;  %vm330_vm3 = vweird.f32 %v324_v19  ;;  %v393_v33 = vpop.permute.xlu2 %392 }
 0x10f   : > { %v396_v41 = vsub.f32 %v393_v33, %v395_v32 }
 0x110   : > { %v337_v27 = vor.u32 1.1754944e-38, %v336_v23  ;;  %vm335_vm5 = vcmp.eq.f32.partialorder %v334_v25, 8.507059e+37 }
 0x111   : > { %v397_v44 = vand.u32 2147483647, %v396_v41 }
 0x114   : > { %v730_v20 = vpop.eup %729 }
 0x115   : > { %v326_v21 = vmul.f32 %v730_v20, %v324_v19  ;;  %vm331_vm2 = vweird.f32 %v730_v20  ;;  %v385_v19 = vpop.permute.xlu1 %384 }
 0x116   : > { %vm332_vm4 = vmor %vm330_vm3, %vm331_vm2 }
 0x117   : > { %v327_v22 = vsub.f32 1.0, %v326_v21 }
 0x119   : > { %v328_v24 = vmul.f32 %v730_v20, %v327_v22 }
 0x11b   : > { %v329_v26 = vadd.f32 %v730_v20, %v328_v24 }
 0x11d   : > { %v333_v28 = vsel %vm332_vm4, %v730_v20, %v329_v26 }
 0x11e   : > { %v338_v29 = vsel %vm335_vm5, %v337_v27, %v333_v28 }
 0x11f   : > { %v339_v30 = vmul.f32 %v728_v12, %v338_v29  ;;  %v372_v12 = vperm.slane %v924_v31, 0  ;;  %v381_v29 = vand.u32 2147483647, %v380_v18 }
 0x120   : > { %v430_v42 = vpop.permute.xlu0 %429 }
 0x121   : > { %652 = vmatmul.msk.f32.vlgmr.msra.gmra.mxu0 %vm315_vm0, %v339_v30  ;;  %v433_v47 = vmin.f32 %v430_v42, %v432_v40  ;;  %v478_v55 = vmax.f32 %v430_v42, %v432_v40  ;;  %v373_v17 = vsub.f32 %v370_v8, %v372_v12  ;;  %v388_v30 = vsub.f32 %v385_v19, %v387_v16 }
 0x123   : > { %v440_v50 = vsub.f32 %v433_v47, %v439_v46  ;;  %v480_v61 = vsub.f32 %v478_v55, %v479_v54  ;;  %v374_v28 = vand.u32 2147483647, %v373_v17  ;;  %v389_v40 = vand.u32 2147483647, %v388_v30 }
 0x125   : > { %v441_v57 = vmax.f32 %v440_v50, 0.0  ;;  %v481_v0 = vmul.f32 %v480_v61, %v477_v60  ;;  %v382_v39 = vadd.f32 %v381_v29, %v374_v28 }
 0x127   : > { %v442_v62 = vmul.f32 %v441_v57, %v427_v56  ;;  %v483_v2 = vadd.f32 1e-07, %v481_v0  ;;  %v390_v31 = vadd.f32 %v389_v40, %v382_v39 }
 0x129   : > { %v458_v1 = vsub.f32 %v457_v63, %v442_v62  ;;  %731 = vrcp.f32 %v483_v2  ;;  %vm489_vm8 = vweird.f32 %v483_v2  ;;  %v495_v21 = vand.u32 2147483648, %v483_v2 }
 0x12a   : > { %v493_v26 = vand.u32 2147483647, %v483_v2  ;;  %v398_v47 = vadd.f32 %v397_v44, %v390_v31 }
 0x12b   : > { %v459_v3 = vadd.f32 1e-07, %v458_v1  ;;  %v496_v35 = vor.u32 1.1754944e-38, %v495_v21  ;;  %v482_v38 = vsub.f32 %v481_v0, %v458_v1 }
 0x12c   : > { %vm494_vm13 = vcmp.eq.f32.partialorder %v493_v26, 8.507059e+37 }
 0x12d   : > { %733 = vrcp.f32 %v459_v3  ;;  %vm465_vm6 = vweird.f32 %v459_v3  ;;  %v471_v20 = vand.u32 2147483648, %v459_v3  ;;  %v469_v24 = vand.u32 2147483647, %v459_v3 }
 0x12f   : > { %v732_v4 = vpop.eup %731  ;;  %v472_v34 = vor.u32 1.1754944e-38, %v471_v20  ;;  %vm470_vm12 = vcmp.eq.f32.partialorder %v469_v24, 8.507059e+37 }
 0x130   : > { %v485_v7 = vmul.f32 %v732_v4, %v483_v2  ;;  %vm490_vm9 = vweird.f32 %v732_v4 }
 0x131   : > { %vm938_vm11 = vmor %vm489_vm8, %vm490_vm9 }
 0x132   : > { %v486_v10 = vsub.f32 1.0, %v485_v7 }
 0x133   : > { %v734_v5 = vpop.eup %733 }
 0x134   : > { %v461_v6 = vmul.f32 %v734_v5, %v459_v3  ;;  %v487_v15 = vmul.f32 %v732_v4, %v486_v10  ;;  %vm466_vm7 = vweird.f32 %v734_v5 }
 0x135   : > { %vm934_vm10 = vmor %vm465_vm6, %vm466_vm7 }
 0x136   : > { %v462_v9 = vsub.f32 1.0, %v461_v6  ;;  %v488_v25 = vadd.f32 %v732_v4, %v487_v15 }
 0x138   : > { %v463_v14 = vmul.f32 %v734_v5, %v462_v9  ;;  %v492_v37 = vsel %vm938_vm11, %v732_v4, %v488_v25 }
 0x139   : > { %v497_v43 = vsel %vm494_vm13, %v496_v35, %v492_v37 }
 0x13a   : > { %v464_v22 = vadd.f32 %v734_v5, %v463_v14  ;;  %v498_v46 = vmul.f32 %v497_v43, %v482_v38 }
 0x13c   : > { %v468_v36 = vsel %vm934_vm10, %v734_v5, %v464_v22 }
 0x13d   : > { %v473_v42 = vsel %vm470_vm12, %v472_v34, %v468_v36 }
 0x13e   : > { %v474_v45 = vmul.f32 %v473_v42, %v442_v62 }
 0x140   : > { %v499_v48 = vsub.f32 %v474_v45, %v498_v46 }
 0x142   : > { %v500_v49 = vsub.f32 %v398_v47, %v499_v48 }
 0x19e   : > { %v364_v50 = vpop.f32.mrf.mxu0 }
 0x19f   : > { %v501_v51 = vsub.f32 %v500_v49, %v364_v50 }
 0x1a1   : > { %502 = vst [vmem:[%s282_s9] sm:$0xff] %v501_v51 }
 0x1a2   : > { %762 = shalt.err (!%p759_p5)
}
 0x1a3   : > { %657 = dma.vmem_to_hbm [thread:$0]  (%p886_p4), %s519_s10, 128, %s521_s11, %s504_s12  }
 0x1a4 PF: > { %p663_p6 = scmp.ge.s32.totalorder %s813_s20, 2  ;;  %s532_s29 = sand.u32 1, %s793_s15  }
 0x1a5   : > { %s533_s30 = scalar_lea.sflag [#allocation3], %s532_s29 }
 0x1a6   : > { %p660_p7 = pnand %p663_p6, %p893_p8 }
 0x1a8   : > { %p661_p9 = pneg %p660_p7 }
 0x1aa   : > { %788 = dma.done.wait (%p661_p9), %s533_s30, 128  }
 0x1ab   : > { %790 = vsyncadd (%p661_p9), %s533_s30, 4294967168  ;;  %s17_s20 = sadd.s32 1, %s813_s20   ;;  %s995_s15 = smov %s797_s16 }
 0x1ac   : > { %p14_p10 = scmp.ge.s32.totalorder %s17_s20, 4   ;;  %s996_s16 = smov %s801_s17 }
 0x1ad   : > { %s997_s17 = smov %s899_s28  ;;  %s998_s18 = smov %s809_s19 }
 0x1ae   : > { %s999_s19 = smov %s1001_s23  ;;  %16 = sbr.rel (!%p14_p10) target bundleno = 4 (0x4), region = 80 }
 0x1b3   :  { %539 = vsyncpa [#allocation3], 1 }
 0x1b4   :  { %541 = vsyncpa [#allocation3 + $0x1], 1 }

</bundles_post_ra>
